<compile_context>
chip_gen: v6e
topology: v6e:2x2x1
jax: 0.10.0
libtpu: 0.0.40
codegen_flags: <defaults>
</compile_context>

<pallas_src>
import jax
import jax.numpy as jnp
import numpy as np
from jax.experimental import pallas as pl
from jax.experimental.pallas import tpu as pltpu

_LANES = 128
_SUBLANES = 8
_PAD_LOGIT = -60000.0      # finite in f16/bf16/f32; exp(-|x|) underflows to 0
_MAX_TILE_ROWS = 4096      # 4096 * 128 * 4 B = 2 MiB per f32 input block


def _bce_dice_kernel(p_ref, t_ref, bce_out, dice_out,
                     bce_vec, inter_vec, psum_vec, tsum_vec):
    j = pl.program_id(1)

    @pl.when(j == 0)
    def _():
        bce_vec[...] = jnp.zeros_like(bce_vec)
        inter_vec[...] = jnp.zeros_like(inter_vec)
        psum_vec[...] = jnp.zeros_like(psum_vec)
        tsum_vec[...] = jnp.zeros_like(tsum_vec)

    x = p_ref[...].astype(jnp.float32)       # (TILE_R, 128) logits of sample b
    t = t_ref[...].astype(jnp.float32)       # (TILE_R, 128) targets of sample b

    # Single shared exponential for BCE-with-logits and the stable sigmoid.
    e = jnp.exp(-jnp.abs(x))
    bce = jnp.maximum(x, 0.0) - x * t + jnp.log1p(e)
    s = jnp.where(x >= 0.0, 1.0, e) / (1.0 + e)          # sigmoid(x), stable

    def _partial(v):
        # (TILE_R,128) -> (8,128): layout-preserving reshape + vreg adds (VPU).
        return jnp.sum(v.reshape(-1, _SUBLANES, _LANES), axis=0)

    bce_vec[...] += _partial(bce)
    inter_vec[...] += _partial(s * t)
    psum_vec[...] += _partial(s)
    tsum_vec[...] += _partial(t)

    @pl.when(j == pl.num_programs(1) - 1)
    def _():
        bce_sum = jnp.sum(bce_vec[...])
        inter = jnp.sum(inter_vec[...])
        psum = jnp.sum(psum_vec[...])
        tsum = jnp.sum(tsum_vec[...])
        dice = (2.0 * inter + 1.0) / (psum + tsum + 1.0)
        bce_out[...] = jnp.reshape(bce_sum, (1, 1))
        dice_out[...] = jnp.reshape(1.0 - dice, (1, 1))


def _round_up(x, m):
    return ((x + m - 1) // m) * m


def _tile_plan(n_true, max_tile_rows):
    """Balanced full-size tiles: (tile_rows, n_inner, padded_rows)."""
    rows = _round_up(max(1, -(-n_true // _LANES)), _SUBLANES)
    n_inner = max(1, -(-rows // max_tile_rows))
    tile_r = _round_up(-(-rows // n_inner), _SUBLANES)
    return tile_r, n_inner, tile_r * n_inner


def _flatten_pad(x, rows, pad_value):
    b = x.shape[0]
    flat = x.reshape(b, -1)
    pad = rows * _LANES - flat.shape[1]
    if pad:
        flat = jnp.pad(flat, ((0, 0), (0, pad)), constant_values=pad_value)
    return flat.reshape(b, rows, _LANES)


def bce_dice_loss(preds, targets, *, max_tile_rows=_MAX_TILE_ROWS):
    """preds/targets: (B, C, H, W); preds are logits. Returns scalar f32 loss."""
    assert preds.shape == targets.shape
    B = preds.shape[0]
    n_true = int(np.prod(preds.shape[1:]))
    tile_r, n_inner, rows = _tile_plan(n_true, max_tile_rows)
    n_pad = rows * _LANES

    p = _flatten_pad(preds, rows, _PAD_LOGIT)     # keep native dtype in HBM
    t = _flatten_pad(targets, rows, 0)

    cost = pl.CostEstimate(
        flops=12 * B * n_pad,
        transcendentals=3 * B * n_pad,
        bytes_accessed=int(B * n_pad * (p.dtype.itemsize + t.dtype.itemsize) + 8 * B),
    )

    bce_sums, dice_terms = pl.pallas_call(
        _bce_dice_kernel,
        out_shape=(jax.ShapeDtypeStruct((B, 1, 1), jnp.float32),
                   jax.ShapeDtypeStruct((B, 1, 1), jnp.float32)),
        grid_spec=pltpu.PrefetchScalarGridSpec(
            num_scalar_prefetch=0,
            grid=(B, n_inner),
            in_specs=[
                pl.BlockSpec((None, tile_r, _LANES), lambda b, j: (b, j, 0)),
                pl.BlockSpec((None, tile_r, _LANES), lambda b, j: (b, j, 0)),
            ],
            out_specs=[
                pl.BlockSpec((None, 1, 1), lambda b, j: (b, 0, 0)),
                pl.BlockSpec((None, 1, 1), lambda b, j: (b, 0, 0)),
            ],
            scratch_shapes=[pltpu.VMEM((_SUBLANES, _LANES), jnp.float32)] * 4,
        ),
        compiler_params=pltpu.CompilerParams(
            dimension_semantics=("parallel", "arbitrary")),
        cost_estimate=cost,
    )(p, t)

    bce = jnp.sum(bce_sums) / (B * n_true)     # mean over true (unpadded) elements
    dice = jnp.mean(dice_terms)                # mean over batch of (1 - dice_i)
    return 0.5 * bce + 0.5 * dice


def _reference(preds, targets):
    x = preds.astype(jnp.float32)
    t = targets.astype(jnp.float32)
    bce = jnp.mean(jnp.maximum(x, 0.0) - x * t + jnp.log1p(jnp.exp(-jnp.abs(x))))
    s = jax.nn.sigmoid(x)
    B = x.shape[0]
    sr = s.reshape(B, -1)
    tr = t.reshape(B, -1)
    dice = (2.0 * jnp.sum(sr * tr, axis=1) + 1.0) / (
        jnp.sum(sr, axis=1) + jnp.sum(tr, axis=1) + 1.0
    )
    return 0.5 * bce + 0.5 * jnp.mean(1.0 - dice)


if __name__ == "__main__":
    key = jax.random.PRNGKey(0)

    # Main case: (B, C, H, W) = (2, 4, 16, 16), single tile per sample.
    k1, k2 = jax.random.split(key)
    preds = jax.random.normal(k1, (2, 4, 16, 16), dtype=jnp.float32)            # logits
    targets = jax.random.bernoulli(k2, 0.5, (2, 4, 16, 16)).astype(jnp.float32)
    loss = bce_dice_loss(preds, targets)
    jax.block_until_ready(loss)
    np.testing.assert_allclose(np.asarray(loss), np.asarray(_reference(preds, targets)),
                               rtol=1e-5, atol=1e-5)

    # Ragged case: sample length not a multiple of 8*128 (exercises padding).
    k3, k4 = jax.random.split(k2)
    p2 = jax.random.normal(k3, (2, 3, 15, 17), dtype=jnp.float32)
    t2 = jax.random.bernoulli(k4, 0.3, (2, 3, 15, 17)).astype(jnp.float32)
    loss2 = bce_dice_loss(p2, t2)
    jax.block_until_ready(loss2)
    np.testing.assert_allclose(np.asarray(loss2), np.asarray(_reference(p2, t2)),
                               rtol=1e-5, atol=1e-5)

    # Multi-tile case: force several inner tiles per sample (accumulator path).
    k5, k6 = jax.random.split(k4)
    p3 = jax.random.normal(k5, (2, 4, 32, 32), dtype=jnp.float32)
    t3 = jax.random.bernoulli(k6, 0.5, (2, 4, 32, 32)).astype(jnp.float32)
    loss3 = bce_dice_loss(p3, t3, max_tile_rows=8)
    jax.block_until_ready(loss3)
    np.testing.assert_allclose(np.asarray(loss3), np.asarray(_reference(p3, t3)),
                               rtol=1e-5, atol=1e-5)

    print("KERNEL_OK")
</pallas_src>

<mosaic_0001>
module attributes {stable_mosaic.version = 11 : i64} {
  func.func @_bce_dice_kernel(%arg0: i32, %arg1: i32, %arg2: memref<1x8x128xf32, #tpu.memory_space<vmem>>, %arg3: memref<1x8x128xf32, #tpu.memory_space<vmem>>, %arg4: memref<1x1x1xf32, #tpu.memory_space<vmem>>, %arg5: memref<1x1x1xf32, #tpu.memory_space<vmem>>, %arg6: memref<8x128xf32, #tpu.memory_space<vmem>>, %arg7: memref<8x128xf32, #tpu.memory_space<vmem>>, %arg8: memref<8x128xf32, #tpu.memory_space<vmem>>, %arg9: memref<8x128xf32, #tpu.memory_space<vmem>>) attributes {dimension_semantics = [#tpu.dimension_semantics<parallel>, #tpu.dimension_semantics<arbitrary>], iteration_bounds = array<i64: 2, 1>, scalar_prefetch = 0 : i64, scratch_operands = 4 : i64, tpu.core_type = #tpu.core_type<tc>, window_params = [{transform_indices = @transform_0, window_bounds = array<i64: 1, 8, 128>}, {transform_indices = @transform_1, window_bounds = array<i64: 1, 8, 128>}, {transform_indices = @transform_2, window_bounds = array<i64: 1, 1, 1>}, {transform_indices = @transform_3, window_bounds = array<i64: 1, 1, 1>}]} {
    %c0_i32 = arith.constant 0 : i32
    %0 = arith.cmpi eq, %arg1, %c0_i32 : i32
    %1 = arith.extui %0 : i1 to i32
    %c0_i32_0 = arith.constant 0 : i32
    %2 = arith.cmpi ne, %1, %c0_i32_0 : i32
    scf.if %2 {
      %cst_32 = arith.constant 0.000000e+00 : f32
      %48 = vector.broadcast %cst_32 : f32 to vector<8x128xf32>
      %c0_33 = arith.constant 0 : index
      %c0_34 = arith.constant 0 : index
      %49 = vector.load %arg6[%c0_33, %c0_34] : memref<8x128xf32, #tpu.memory_space<vmem>>, vector<8x128xf32>
      tpu.vector_store %arg6[%c0_33, %c0_34], %48 {strides = array<i32>} : memref<8x128xf32, #tpu.memory_space<vmem>>, vector<8x128xf32>,
      %cst_35 = arith.constant 0.000000e+00 : f32
      %50 = vector.broadcast %cst_35 : f32 to vector<8x128xf32>
      %c0_36 = arith.constant 0 : index
      %c0_37 = arith.constant 0 : index
      %51 = vector.load %arg7[%c0_36, %c0_37] : memref<8x128xf32, #tpu.memory_space<vmem>>, vector<8x128xf32>
      tpu.vector_store %arg7[%c0_36, %c0_37], %50 {strides = array<i32>} : memref<8x128xf32, #tpu.memory_space<vmem>>, vector<8x128xf32>,
      %cst_38 = arith.constant 0.000000e+00 : f32
      %52 = vector.broadcast %cst_38 : f32 to vector<8x128xf32>
      %c0_39 = arith.constant 0 : index
      %c0_40 = arith.constant 0 : index
      %53 = vector.load %arg8[%c0_39, %c0_40] : memref<8x128xf32, #tpu.memory_space<vmem>>, vector<8x128xf32>
      tpu.vector_store %arg8[%c0_39, %c0_40], %52 {strides = array<i32>} : memref<8x128xf32, #tpu.memory_space<vmem>>, vector<8x128xf32>,
      %cst_41 = arith.constant 0.000000e+00 : f32
      %54 = vector.broadcast %cst_41 : f32 to vector<8x128xf32>
      %c0_42 = arith.constant 0 : index
      %c0_43 = arith.constant 0 : index
      %55 = vector.load %arg9[%c0_42, %c0_43] : memref<8x128xf32, #tpu.memory_space<vmem>>, vector<8x128xf32>
      tpu.vector_store %arg9[%c0_42, %c0_43], %54 {strides = array<i32>} : memref<8x128xf32, #tpu.memory_space<vmem>>, vector<8x128xf32>,
    } else {
    }
    %c0 = arith.constant 0 : index
    %c0_1 = arith.constant 0 : index
    %c0_2 = arith.constant 0 : index
    %3 = vector.load %arg2[%c0, %c0_1, %c0_2] : memref<1x8x128xf32, #tpu.memory_space<vmem>>, vector<1x8x128xf32>
    %4 = vector.shape_cast %3 : vector<1x8x128xf32> to vector<8x128xf32>
    %c0_3 = arith.constant 0 : index
    %c0_4 = arith.constant 0 : index
    %c0_5 = arith.constant 0 : index
    %5 = vector.load %arg3[%c0_3, %c0_4, %c0_5] : memref<1x8x128xf32, #tpu.memory_space<vmem>>, vector<1x8x128xf32>
    %6 = vector.shape_cast %5 : vector<1x8x128xf32> to vector<8x128xf32>
    %7 = math.absf %4 : vector<8x128xf32>
    %cst = arith.constant 0.000000e+00 : f32
    %8 = vector.broadcast %cst : f32 to vector<8x128xf32>
    %9 = arith.subf %8, %7 : vector<8x128xf32>
    %10 = math.exp %9 : vector<8x128xf32>
    %cst_6 = arith.constant 0.000000e+00 : f32
    %11 = vector.broadcast %cst_6 : f32 to vector<8x128xf32>
    %12 = arith.maximumf %4, %11 : vector<8x128xf32>
    %13 = arith.mulf %4, %6 : vector<8x128xf32>
    %14 = arith.subf %12, %13 : vector<8x128xf32>
    %15 = math.log1p %10 : vector<8x128xf32>
    %16 = arith.addf %14, %15 : vector<8x128xf32>
    %cst_7 = arith.constant 0.000000e+00 : f32
    %17 = vector.broadcast %cst_7 : f32 to vector<8x128xf32>
    %18 = arith.cmpf oge, %4, %17 : vector<8x128xf32>
    %cst_8 = arith.constant 1.000000e+00 : f32
    %19 = vector.broadcast %cst_8 : f32 to vector<8x128xf32>
    %20 = arith.select %18, %19, %10 : vector<8x128xi1>, vector<8x128xf32>
    %cst_9 = arith.constant 1.000000e+00 : f32
    %21 = vector.broadcast %cst_9 : f32 to vector<8x128xf32>
    %22 = arith.addf %21, %10 : vector<8x128xf32>
    %23 = arith.divf %20, %22 : vector<8x128xf32>
    %c0_10 = arith.constant 0 : index
    %c0_11 = arith.constant 0 : index
    %24 = vector.load %arg6[%c0_10, %c0_11] : memref<8x128xf32, #tpu.memory_space<vmem>>, vector<8x128xf32>
    %25 = vector.shape_cast %16 : vector<8x128xf32> to vector<1x8x128xf32>
    %cst_12 = arith.constant dense<0.000000e+00> : vector<8x128xf32>
    %26 = vector.multi_reduction <add>, %25, %cst_12 [0] : vector<1x8x128xf32> to vector<8x128xf32>
    %27 = arith.addf %24, %26 : vector<8x128xf32>
    %c0_13 = arith.constant 0 : index
    %c0_14 = arith.constant 0 : index
    %28 = vector.load %arg6[%c0_13, %c0_14] : memref<8x128xf32, #tpu.memory_space<vmem>>, vector<8x128xf32>
    tpu.vector_store %arg6[%c0_13, %c0_14], %27 {strides = array<i32>} : memref<8x128xf32, #tpu.memory_space<vmem>>, vector<8x128xf32>,
    %c0_15 = arith.constant 0 : index
    %c0_16 = arith.constant 0 : index
    %29 = vector.load %arg7[%c0_15, %c0_16] : memref<8x128xf32, #tpu.memory_space<vmem>>, vector<8x128xf32>
    %30 = arith.mulf %23, %6 : vector<8x128xf32>
    %31 = vector.shape_cast %30 : vector<8x128xf32> to vector<1x8x128xf32>
    %cst_17 = arith.constant dense<0.000000e+00> : vector<8x128xf32>
    %32 = vector.multi_reduction <add>, %31, %cst_17 [0] : vector<1x8x128xf32> to vector<8x128xf32>
    %33 = arith.addf %29, %32 : vector<8x128xf32>
    %c0_18 = arith.constant 0 : index
    %c0_19 = arith.constant 0 : index
    %34 = vector.load %arg7[%c0_18, %c0_19] : memref<8x128xf32, #tpu.memory_space<vmem>>, vector<8x128xf32>
    tpu.vector_store %arg7[%c0_18, %c0_19], %33 {strides = array<i32>} : memref<8x128xf32, #tpu.memory_space<vmem>>, vector<8x128xf32>,
    %c0_20 = arith.constant 0 : index
    %c0_21 = arith.constant 0 : index
    %35 = vector.load %arg8[%c0_20, %c0_21] : memref<8x128xf32, #tpu.memory_space<vmem>>, vector<8x128xf32>
    %36 = vector.shape_cast %23 : vector<8x128xf32> to vector<1x8x128xf32>
    %cst_22 = arith.constant dense<0.000000e+00> : vector<8x128xf32>
    %37 = vector.multi_reduction <add>, %36, %cst_22 [0] : vector<1x8x128xf32> to vector<8x128xf32>
    %38 = arith.addf %35, %37 : vector<8x128xf32>
    %c0_23 = arith.constant 0 : index
    %c0_24 = arith.constant 0 : index
    %39 = vector.load %arg8[%c0_23, %c0_24] : memref<8x128xf32, #tpu.memory_space<vmem>>, vector<8x128xf32>
    tpu.vector_store %arg8[%c0_23, %c0_24], %38 {strides = array<i32>} : memref<8x128xf32, #tpu.memory_space<vmem>>, vector<8x128xf32>,
    %c0_25 = arith.constant 0 : index
    %c0_26 = arith.constant 0 : index
    %40 = vector.load %arg9[%c0_25, %c0_26] : memref<8x128xf32, #tpu.memory_space<vmem>>, vector<8x128xf32>
    %41 = vector.shape_cast %6 : vector<8x128xf32> to vector<1x8x128xf32>
    %cst_27 = arith.constant dense<0.000000e+00> : vector<8x128xf32>
    %42 = vector.multi_reduction <add>, %41, %cst_27 [0] : vector<1x8x128xf32> to vector<8x128xf32>
    %43 = arith.addf %40, %42 : vector<8x128xf32>
    %c0_28 = arith.constant 0 : index
    %c0_29 = arith.constant 0 : index
    %44 = vector.load %arg9[%c0_28, %c0_29] : memref<8x128xf32, #tpu.memory_space<vmem>>, vector<8x128xf32>
    tpu.vector_store %arg9[%c0_28, %c0_29], %43 {strides = array<i32>} : memref<8x128xf32, #tpu.memory_space<vmem>>, vector<8x128xf32>,
    %c0_i32_30 = arith.constant 0 : i32
    %45 = arith.cmpi eq, %arg1, %c0_i32_30 : i32
    %46 = arith.extui %45 : i1 to i32
    %c0_i32_31 = arith.constant 0 : i32
    %47 = arith.cmpi ne, %46, %c0_i32_31 : i32
    scf.if %47 {
      %c0_32 = arith.constant 0 : index
      %c0_33 = arith.constant 0 : index
      %48 = vector.load %arg6[%c0_32, %c0_33] : memref<8x128xf32, #tpu.memory_space<vmem>>, vector<8x128xf32>
      %49 = vector.shape_cast %48 : vector<8x128xf32> to vector<1x8x128xf32>
      %cst_34 = arith.constant dense<0.000000e+00> : vector<1xf32>
      %50 = vector.multi_reduction <add>, %49, %cst_34 [1, 2] : vector<1x8x128xf32> to vector<1xf32>
      %51 = vector.shape_cast %50 : vector<1xf32> to vector<1x1x1xf32>
      %52 = vector.extract %51[0, 0, 0] : f32 from vector<1x1x1xf32>
      %c0_35 = arith.constant 0 : index
      %c0_36 = arith.constant 0 : index
      %53 = vector.load %arg7[%c0_35, %c0_36] : memref<8x128xf32, #tpu.memory_space<vmem>>, vector<8x128xf32>
      %54 = vector.shape_cast %53 : vector<8x128xf32> to vector<1x8x128xf32>
      %cst_37 = arith.constant dense<0.000000e+00> : vector<1xf32>
      %55 = vector.multi_reduction <add>, %54, %cst_37 [1, 2] : vector<1x8x128xf32> to vector<1xf32>
      %56 = vector.shape_cast %55 : vector<1xf32> to vector<1x1x1xf32>
      %57 = vector.extract %56[0, 0, 0] : f32 from vector<1x1x1xf32>
      %c0_38 = arith.constant 0 : index
      %c0_39 = arith.constant 0 : index
      %58 = vector.load %arg8[%c0_38, %c0_39] : memref<8x128xf32, #tpu.memory_space<vmem>>, vector<8x128xf32>
      %59 = vector.shape_cast %58 : vector<8x128xf32> to vector<1x8x128xf32>
      %cst_40 = arith.constant dense<0.000000e+00> : vector<1xf32>
      %60 = vector.multi_reduction <add>, %59, %cst_40 [1, 2] : vector<1x8x128xf32> to vector<1xf32>
      %61 = vector.shape_cast %60 : vector<1xf32> to vector<1x1x1xf32>
      %62 = vector.extract %61[0, 0, 0] : f32 from vector<1x1x1xf32>
      %c0_41 = arith.constant 0 : index
      %c0_42 = arith.constant 0 : index
      %63 = vector.load %arg9[%c0_41, %c0_42] : memref<8x128xf32, #tpu.memory_space<vmem>>, vector<8x128xf32>
      %64 = vector.shape_cast %63 : vector<8x128xf32> to vector<1x8x128xf32>
      %cst_43 = arith.constant dense<0.000000e+00> : vector<1xf32>
      %65 = vector.multi_reduction <add>, %64, %cst_43 [1, 2] : vector<1x8x128xf32> to vector<1xf32>
      %66 = vector.shape_cast %65 : vector<1xf32> to vector<1x1x1xf32>
      %67 = vector.extract %66[0, 0, 0] : f32 from vector<1x1x1xf32>
      %cst_44 = arith.constant 2.000000e+00 : f32
      %68 = arith.mulf %cst_44, %57 : f32
      %cst_45 = arith.constant 1.000000e+00 : f32
      %69 = arith.addf %68, %cst_45 : f32
      %70 = arith.addf %62, %67 : f32
      %cst_46 = arith.constant 1.000000e+00 : f32
      %71 = arith.addf %70, %cst_46 : f32
      %72 = arith.divf %69, %71 : f32
      %73 = vector.broadcast %52 : f32 to vector<1x1xf32>
      %c0_47 = arith.constant 0 : index
      %c0_48 = arith.constant 0 : index
      %c0_49 = arith.constant 0 : index
      %74 = vector.load %arg4[%c0_47, %c0_48, %c0_49] : memref<1x1x1xf32, #tpu.memory_space<vmem>>, vector<1x1x1xf32>
      %75 = vector.shape_cast %74 : vector<1x1x1xf32> to vector<1x1xf32>
      %76 = vector.shape_cast %73 : vector<1x1xf32> to vector<1x1x1xf32>
      tpu.vector_store %arg4[%c0_47, %c0_48, %c0_49], %76 {strides = array<i32>} : memref<1x1x1xf32, #tpu.memory_space<vmem>>, vector<1x1x1xf32>,
      %cst_50 = arith.constant 1.000000e+00 : f32
      %77 = arith.subf %cst_50, %72 : f32
      %78 = vector.broadcast %77 : f32 to vector<1x1xf32>
      %c0_51 = arith.constant 0 : index
      %c0_52 = arith.constant 0 : index
      %c0_53 = arith.constant 0 : index
      %79 = vector.load %arg5[%c0_51, %c0_52, %c0_53] : memref<1x1x1xf32, #tpu.memory_space<vmem>>, vector<1x1x1xf32>
      %80 = vector.shape_cast %79 : vector<1x1x1xf32> to vector<1x1xf32>
      %81 = vector.shape_cast %78 : vector<1x1xf32> to vector<1x1x1xf32>
      tpu.vector_store %arg5[%c0_51, %c0_52, %c0_53], %81 {strides = array<i32>} : memref<1x1x1xf32, #tpu.memory_space<vmem>>, vector<1x1x1xf32>,
    } else {
    }
    return
  }
  func.func @transform_0(%arg0: i32, %arg1: i32) -> (i32, i32, i32) {
    %c0_i32 = arith.constant 0 : i32
    %c0_i32_0 = arith.constant 0 : i32
    return %arg0, %arg1, %c0_i32 : i32, i32, i32
  }
  func.func @transform_1(%arg0: i32, %arg1: i32) -> (i32, i32, i32) {
    %c0_i32 = arith.constant 0 : i32
    %c0_i32_0 = arith.constant 0 : i32
    return %arg0, %arg1, %c0_i32 : i32, i32, i32
  }
  func.func @transform_2(%arg0: i32, %arg1: i32) -> (i32, i32, i32) {
    %c0_i32 = arith.constant 0 : i32
    %c0_i32_0 = arith.constant 0 : i32
    %c0_i32_1 = arith.constant 0 : i32
    return %arg0, %c0_i32, %c0_i32_0 : i32, i32, i32
  }
  func.func @transform_3(%arg0: i32, %arg1: i32) -> (i32, i32, i32) {
    %c0_i32 = arith.constant 0 : i32
    %c0_i32_0 = arith.constant 0 : i32
    %c0_i32_1 = arith.constant 0 : i32
    return %arg0, %c0_i32, %c0_i32_0 : i32, i32, i32
  }
}

</mosaic_0001>

<bundles_post_ra>
// kernel: tpu_custom_call.1
= control target key start
LH: loop header
LB: loop body
LE: loop exit
PB: predicated region body
PF: predicated region fallthrough
CT: control target
= control target key end

     0   :  { %9 = vsyncpa [#allocation7], 0  ;;  %s827_s0 = inlined_call_operand.hbm [shape: f32[2,8,128], index: 0, kind: input, shape index: {}]   ;;  %s828_s1 = inlined_call_operand.hbm [shape: f32[2,8,128], index: 1, kind: input, shape index: {}]   ;;  %s829_s2 = inlined_call_operand.vmem [shape: f32[2,1,1], index: 2, kind: output, shape index: {0}]   ;;  %s830_s3 = inlined_call_operand.vmem [shape: f32[2,1,1], index: 3, kind: output, shape index: {1}]  }
   0x1   :  { %11 = vsyncpa [#allocation7 + $0x1], 0 }
   0x2   :  { %12 = vsyncpa [#allocation9], 0 }
   0x3   :  { %14 = vsyncpa [#allocation9 + $0x1], 0  ;;  %s696_s12 = smov 0   ;;  %s698_s13 = smov 0  }
   0x4   :  { %s700_s14 = smov 0   ;;  %s702_s15 = smov 0  }
   0x5   :  { %s704_s16 = smov 0   ;;  %s706_s17 = smov 0  }
   0x6 LB: > { %s471_s18 = sadd.s32 4294967295, %s672_s17   ;;  %s32_s19 = sadd.s32 1, %s668_s16  ;;  %s672_s17 = sphi %s706_s17, %s20_s17   ;;  %s668_s16 = sphi %s704_s16, %s839_s16   ;;  %s664_s15 = sphi %s702_s15, %s838_s15   ;;  %s660_s14 = sphi %s700_s14, %s837_s14   ;;  %s656_s13 = sphi %s698_s13, %s836_s13   ;;  %s652_s12 = sphi %s696_s12, %s835_s12  }
   0x7   : > { %p34_p0 = scmp.ge.s32.totalorder %s32_s19, 2  ;;  %s41_s20 = sadd.s32 1, %s660_s14 }
   0x8   : > { %p48_p1 = scmp.ne.s32.totalorder %s660_s14, %s656_s13  ;;  %p49_p2 = scmp.eq.s32.totalorder %s672_s17, 0 }
   0x9   : > { %s841_s19 = smov (%p34_p0, %s32_s19), 0  ;;  %p54_p4 = scmp.ne.s32.totalorder %s656_s13, %s652_s12 }
   0xa   : > { %p732_p3 = por %p49_p2, %p48_p1  ;;  %s36_s22 = ssub.s32 %s668_s16, %s841_s19 }
   0xb   : > { %p55_p5 = scmp.eq.s32.totalorder %s471_s18, 0  ;;  %p39_p6 = scmp.eq.s32.totalorder %s36_s22, 0 }
   0xc   : > { %p505_p8 = scmp.lt.s32.totalorder %s672_s17, 2  ;;  %s748_s25 = sand.u32 1, %s660_s14  }
   0xd   : > { %p739_p7 = por %p55_p5, %p54_p4  ;;  %s476_s26 = sshll.u32 %s668_s16, 7 }
   0xe   : > { %s745_s24 = scalar_select %p39_p6, %s660_s14, %s41_s20  }
   0xf   : > { %s475_s27 = sshll.u32 %s748_s25, 3  ;;  %s168_s30 = scalar_lea.hbm %s827_s0, %s476_s26 }
  0x10   : > { %s162_s4 = scalar_lea.vmem [#allocation6], %s475_s27  ;;  %p757_p9 = pnand %p505_p8, %p732_p3 }
  0x11   : > { %s170_s5 = sshll.u32 %s162_s4, 4  ;;  %p479_p10 = scmp.ge.s32.totalorder %s672_s17, 1  ;;  %s171_s5 = int_to_ptr.vmem [resolvable:$true] %s170_s5 }
  0x12   : > { %p194_p11 = scmp.lt.s32.totalorder %s672_s17, 3  ;;  %s159_s7 = scalar_lea.sflag [#allocation7], %s748_s25 }
  0x13   : > { %p564_p12 = pneg %p757_p9  ;;  %s575_s8 = scalar_lea.vmem %s171_s5, 128 }
  0x14   : > { %p576_p13 = scmp.ne.s32.totalorder %s171_s5, %s575_s8  ;;  %s674_s9 = smov [#allocation6]  }
  0x15   : > { %s580_s10 = sshll.u32 %s674_s9, 4  ;;  %s581_s10 = int_to_ptr.vmem [resolvable:$false] %s580_s10 }
  0x16   : > { %p578_p0 = pnand %p576_p13, %p564_p12  ;;  %s582_s11 = scalar_lea.vmem %s581_s10, 256 }
  0x17   : > { %p583_p2 = scmp.lt.s32.totalorder %s171_s5, %s581_s10  ;;  %p584_p3 = scmp.lt.s32.totalorder %s582_s11, %s575_s8 }
  0x18   : > { %p579_p1 = pneg %p578_p0 }
  0x19   : > { %p585_p4 = por %p584_p3, %p583_p2 }
  0x1b   : > { %p586_p5 = pnand %p585_p4, %p579_p1 }
  0x1d   : > { %589 = shalt.err (!%p586_p5)
}
  0x1e   : > { %501 = dma.hbm_to_vmem [thread:$0]  (!%p757_p9), %s168_s30, 128, %s171_s5, %s159_s7  }
  0x1f   : > { %p775_p6 = pnand %p479_p10, %p194_p11  ;;  %s187_s21 = scalar_lea.hbm %s828_s1, %s476_s26 }
  0x20   : > { %s181_s22 = scalar_lea.vmem [#allocation8], %s475_s27  ;;  %s178_s29 = scalar_lea.sflag [#allocation9], %s748_s25 }
  0x21   : > { %s189_s28 = sshll.u32 %s181_s22, 4  ;;  %s675_s30 = smov [#allocation8]   ;;  %s190_s28 = int_to_ptr.vmem [resolvable:$true] %s189_s28 }
  0x22   : > { %s603_s4 = scalar_lea.vmem %s190_s28, 128  ;;  %s608_s5 = sshll.u32 %s675_s30, 4  ;;  %s609_s5 = int_to_ptr.vmem [resolvable:$false] %s608_s5 }
  0x23   : > { %p604_p8 = scmp.ne.s32.totalorder %s190_s28, %s603_s4  ;;  %s610_s7 = scalar_lea.vmem %s609_s5, 256 }
  0x24   : > { %p611_p10 = scmp.lt.s32.totalorder %s190_s28, %s609_s5  ;;  %p612_p11 = scmp.lt.s32.totalorder %s610_s7, %s603_s4 }
  0x25   : > { %p606_p13 = pnand %p604_p8, %p564_p12 }
  0x26   : > { %p613_p1 = por %p612_p11, %p611_p10 }
  0x27   : > { %p607_p0 = pneg %p606_p13 }
  0x29   : > { %p614_p2 = pnand %p613_p1, %p607_p0 }
  0x2b   : > { %617 = shalt.err (!%p614_p2)
}
  0x2c   : > { %504 = dma.hbm_to_vmem [thread:$0]  (!%p757_p9), %s187_s21, 128, %s190_s28, %s178_s29  }
  0x2d   : > { %198 = sbr.rel (%p775_p6) target bundleno = 377 (0x179), region = 28  ;;  %s200_s25 = sand.u32 (!%p775_p6), 1, %s656_s13  }
  0x2e   : > { %s480_s26 = sshll.u32 (!%p775_p6), %s200_s25, 3  ;;  %s201_s27 = scalar_lea.sflag (!%p775_p6), [#allocation7], %s200_s25 }
  0x2f   : > { %s204_s8 = scalar_lea.vmem (!%p775_p6), [#allocation6], %s480_s26 }
  0x32   : > { %643 = dma.done.wait (%p739_p7), %s201_s27, 128  }
  0x33   : > { %645 = vsyncadd (%p739_p7), %s201_s27, 4294967168  ;;  %s210_s9 = scalar_lea.sflag [#allocation9], %s200_s25  ;;  %s213_s10 = scalar_lea.vmem [#allocation8], %s480_s26 }
  0x34   : > { %647 = dma.done.wait (%p739_p7), %s210_s9, 128  }
  0x35   : > { %649 = vsyncadd (%p739_p7), %s210_s9, 4294967168  ;;  %v256_v0 = vld [vmem:[%s204_s8] sm:$0xff]  ;;  %v257_v7 = vld [vmem:[%s213_s10] sm:$0xff]  ;;  %p242_p7 = scmp.lt.s32.totalorder %s664_s15, 1  ;;  %vm349_vm2 = vcmask 0  }
  0x36   : > { %v258_v1 = vand.u32 2147483647, %v256_v0  ;;  %vm275_vm0 = vcmp.ge.f32.partialorder %v256_v0, 0.0  ;;  %v262_v9 = vmax.f32 %v256_v0, 0.0  ;;  %v263_v10 = vmul.f32 %v257_v7, %v256_v0 }
  0x37   : > { %s843_s15 = smov (!%p242_p7, %s664_s15), 1 }
  0x38   : > { %v259_v2 = vsub.f32 0.0, %v258_v1  ;;  %v264_v17 = vsub.f32 %v262_v9, %v263_v10  ;;  %s244_s11 = scalar_lea.vmem %s829_s2, %s843_s15  ;;  %s247_s26 = scalar_lea.vmem %s830_s3, %s843_s15 }
  0x3a   : > { %v260_v3 = vmul.f32 1.442695, %v259_v2 }
  0x3c   : > { %554 = vpow2.f32 %v260_v3 }
  0x49   : > { %v555_v4 = vpop.eup %554 }
  0x4a   : > { %v265_v5 = vadd.f32 1.0, %v555_v4  ;;  %v268_v6 = vmul.f32 -0.5, %v555_v4  ;;  %v271_v11 = vand.u32 2147483647, %v555_v4  ;;  %v276_v12 = vsel %vm275_vm0, 1.0, %v555_v4 }
  0x4c   : > { %556 = vrcp.f32 %v265_v5  ;;  %v269_v8 = vadd.f32 1.0, %v268_v6  ;;  %vm272_vm1 = vcmp.lt.f32.partialorder %v271_v11, 0.0004427343 }
  0x4d   : > { %558 = vlog2.f32 %v265_v5 }
  0x4e   : > { %v270_v14 = vmul.f32 %v555_v4, %v269_v8 }
  0x59   : > { %v557_v13 = vpop.eup %556 }
  0x5a   : > { %v559_v15 = vpop.eup %558  ;;  %v279_v16 = vmul.f32 %v557_v13, %v276_v12 }
  0x5b   : > { %v267_v18 = vmul.f32 0.6931472, %v559_v15 }
  0x5c   : > { %321 = vadd.xlane.f32.xlu1 %v279_v16  ;;  %v285_v21 = vmul.f32 %v279_v16, %v257_v7 }
  0x5d   : > { %v273_v19 = vsel %vm272_vm1, %v270_v14, %v267_v18 }
  0x5e   : > { %v274_v20 = vadd.f32 %v273_v19, %v264_v17 }
  0x60   : > { %301 = vadd.xlane.f32.xlu0 %v274_v20  ;;  %331 = vadd.xlane.f32.xlu1 %v257_v7 }
  0x64   : > { %311 = vadd.xlane.f32.xlu0 %v285_v21 }
  0xe5   : > { %v322_v22 = vpop.xlane.xlu1 %321 }
  0xe6   : > { %v323_v23 = vrot.slane %v322_v22, 4 }
  0xe8   : > { %v324_v24 = vadd.f32 %v323_v23, %v322_v22 }
  0xe9   : > { %v302_v25 = vpop.xlane.xlu0 %301  ;;  %v332_v26 = vpop.xlane.xlu1 %331 }
  0xea   : > { %v303_v27 = vrot.slane %v302_v25, 4  ;;  %v333_v28 = vrot.slane %v332_v26, 4  ;;  %v325_v31 = vrot.slane %v324_v24, 2 }
  0xec   : > { %v304_v29 = vadd.f32 %v303_v27, %v302_v25  ;;  %v334_v30 = vadd.f32 %v333_v28, %v332_v26  ;;  %v326_v38 = vadd.f32 %v325_v31, %v324_v24 }
  0xed   : > { %v312_v32 = vpop.xlane.xlu0 %311 }
  0xee   : > { %v305_v33 = vrot.slane %v304_v29, 2  ;;  %v335_v34 = vrot.slane %v334_v30, 2  ;;  %v313_v35 = vrot.slane %v312_v32, 4  ;;  %v327_v44 = vrot.slane %v326_v38, 1 }
  0xf0   : > { %v314_v36 = vadd.f32 %v313_v35, %v312_v32  ;;  %v306_v37 = vadd.f32 %v305_v33, %v304_v29  ;;  %v336_v39 = vadd.f32 %v335_v34, %v334_v30  ;;  %v328_v48 = vadd.f32 %v327_v44, %v326_v38 }
  0xf2   : > { %v315_v40 = vrot.slane %v314_v36, 2  ;;  %v307_v41 = vrot.slane %v306_v37, 1  ;;  %v337_v46 = vrot.slane %v336_v39, 1 }
  0xf4   : > { %v316_v42 = vadd.f32 %v315_v40, %v314_v36  ;;  %v308_v43 = vadd.f32 %v307_v41, %v306_v37  ;;  %v338_v49 = vadd.f32 %v337_v46, %v336_v39 }
  0xf6   : > { %484 = vpush %v308_v43  ;;  %v317_v45 = vrot.slane %v316_v42, 1 }
  0xf8   : > { %v318_v47 = vadd.f32 %v317_v45, %v316_v42 }
  0xfa   : > { %486 = vpush %v318_v47 }
  0xfb   : > { %488 = vpush %v328_v48 }
  0xfc   : > { %490 = vpush %v338_v49 }
 0x127   : > { %s485_s12 = spop %484 }
 0x128   : > { %v348_v50 = vstv %s485_s12 }
 0x129   : > { %350 = vst.msk [vmem:[%s244_s11] sm:$0x1] %vm349_vm2, %v348_v50 }
 0x12b   : > { %s487_s18 = spop %486 }
 0x12c   : > { %s489_s20 = spop %488  ;;  %s340_s29 = smul.f32 2.0, %s487_s18 }
 0x12d   : > { %s491_s21 = spop %490 }
 0x12e   : > { %s342_s22 = sadd.f32 %s491_s21, %s489_s20 }
 0x12f   : > { %s341_s4 = sadd.f32 1.0, %s340_s29 }
 0x130   : > { %s343_s28 = sadd.f32 1.0, %s342_s22 }
 0x132   : > { %v344_v51 = vstv %s343_s28 }
 0x133   : > { %560 = vrcp.f32 %v344_v51 }
 0x140   : > { %v561_v52 = vpop.eup %560 }
 0x141   : > { %492 = vpush %v561_v52 }
 0x172   : > { %s493_s30 = spop %492 }
 0x173   : > { %s347_s5 = smul.f32 %s493_s30, %s341_s4 }
 0x175   : > { %s351_s27 = ssub.f32 1.0, %s347_s5 }
 0x177   : > { %v352_v53 = vstv %s351_s27 }
 0x178   : > { %353 = vst.msk [vmem:[%s247_s26] sm:$0x1] %vm349_vm2, %v352_v53 }
 0x179 PF: > { %s20_s17 = sadd.s32 1, %s672_s17   ;;  %s835_s12 = smov %s656_s13 }
 0x17a   : > { %p17_p9 = scmp.ge.s32.totalorder %s20_s17, 4   ;;  %s836_s13 = smov %s660_s14 }
 0x17b   : > { %s837_s14 = smov %s745_s24  ;;  %s838_s15 = smov %s668_s16 }
 0x17c   : > { %s839_s16 = smov %s841_s19  ;;  %19 = sbr.rel (!%p17_p9) target bundleno = 6 (0x6), region = 101 }
 0x181   :  { %383 = vsyncpa [#allocation7], 1 }
 0x182   :  { %385 = vsyncpa [#allocation7 + $0x1], 1 }
 0x183   :  { %386 = vsyncpa [#allocation9], 1 }
 0x184   :  { %388 = vsyncpa [#allocation9 + $0x1], 1 }

</bundles_post_ra>
